<compile_context>
chip_gen: v7x
topology: tpu7x:2x2x1
jax: 0.10.0
libtpu: 0.0.40
codegen_flags: <defaults>
</compile_context>

<pallas_src>
import jax
import jax.numpy as jnp
from jax import lax
from jax.experimental import pallas as pl
from jax.experimental.pallas import tpu as pltpu


def point_module_kernel(x_ref, w1_ref, b1_ref, w2_ref, b2_ref, o_ref):
    # ---- pn[0..2]: 1x1 conv (matmul, BN scale pre-folded into W) + bias + ReLU ----
    h1 = jnp.dot(x_ref[...], w1_ref[...], preferred_element_type=jnp.float32)
    h1 = jnp.maximum(h1 + b1_ref[...], 0.0)

    # ---- pn[3..5]: 1x1 conv + bias + ReLU (second matmul fed bf16) ----
    h2 = jnp.dot(h1.astype(w2_ref.dtype), w2_ref[...],
                 preferred_element_type=jnp.float32)
    h2 = jnp.maximum(h2 + b2_ref[...], 0.0)

    # ---- MaxPool1d(kernel=3, stride=1, padding=1) along the channel axis ----
    # out[:, j] = max(h2[:, j-1], h2[:, j], h2[:, j+1]) with -inf edge padding.
    L1 = h2.shape[1]
    lane = lax.broadcasted_iota(jnp.int32, (1, L1), 1)  # (1, L1); broadcasts over rows
    neg_inf = jnp.float32(-jnp.inf)
    # pltpu.roll requires non-negative shifts: left neighbor = roll(+1),
    # right neighbor = roll(L1 - 1)  (== roll(-1) mod L1).
    left = jnp.where(lane == 0, neg_inf, pltpu.roll(h2, shift=1, axis=1))
    right = jnp.where(lane == L1 - 1, neg_inf, pltpu.roll(h2, shift=L1 - 1, axis=1))
    o_ref[...] = jnp.maximum(h2, jnp.maximum(left, right))


def fold_bn_into_conv(w, gamma, beta, mean, var, eps=1e-3):
    """Fold eval-mode BatchNorm into the preceding bias-free 1x1 conv.

    w: (C_in, C_out) matmul-layout weight.
    Returns (w_folded in bf16, bias as (1, C_out) f32)."""
    scale = gamma / jnp.sqrt(var + eps)
    w_folded = (w * scale[None, :]).astype(jnp.bfloat16)
    bias = (beta - mean * scale).reshape(1, -1).astype(jnp.float32)
    return w_folded, bias


def point_module_forward(x, w1, b1, w2, b2, *, tb=256):
    """x: NCHW (or any (B, ...)) tensor whose non-batch dims flatten to C_in.
    w1, w2: bf16 (C_in, L0) / (L0, L1) BN-scale-folded weights; b1, b2: (1, L*) f32."""
    B = x.shape[0]
    x2d = x.reshape(B, -1).astype(jnp.bfloat16)   # flatten(1,-1); H=W=1 conv == matmul
    C_in = x2d.shape[1]
    L0, L1 = w1.shape[1], w2.shape[1]
    assert w1.shape[0] == C_in and w2.shape[0] == L0

    # Pad the point dimension up to the tile so every grid step is full.
    Bp = pl.cdiv(B, tb) * tb
    if Bp != B:
        x2d = jnp.pad(x2d, ((0, Bp - B), (0, 0)))

    flops = 2 * Bp * (C_in * L0 + L0 * L1)
    bytes_accessed = (Bp * C_in * 2 + C_in * L0 * 2 + L0 * L1 * 2
                      + (L0 + L1) * 4 + Bp * L1 * 4)

    out2d = pl.pallas_call(
        point_module_kernel,
        out_shape=jax.ShapeDtypeStruct((Bp, L1), jnp.float32),
        grid=(Bp // tb,),
        in_specs=[
            pl.BlockSpec((tb, C_in), lambda i: (i, 0)),   # x tile, streamed per step
            pl.BlockSpec((C_in, L0), lambda i: (0, 0)),   # w1: resident across grid
            pl.BlockSpec((1, L0), lambda i: (0, 0)),      # b1: resident
            pl.BlockSpec((L0, L1), lambda i: (0, 0)),     # w2: resident
            pl.BlockSpec((1, L1), lambda i: (0, 0)),      # b2: resident
        ],
        out_specs=pl.BlockSpec((tb, L1), lambda i: (i, 0)),
        compiler_params=pltpu.CompilerParams(
            dimension_semantics=("parallel",)),
        cost_estimate=pl.CostEstimate(flops=flops, transcendentals=0,
                                      bytes_accessed=bytes_accessed),
    )(x2d, w1, b1, w2, b2)

    # drop batch padding; final view(B, L1, 1, 1)
    return out2d[:B].reshape(B, L1, 1, 1)


if __name__ == "__main__":
    key = jax.random.PRNGKey(0)
    ks = jax.random.split(key, 11)

    # Small synthetic config: input (2, 4, 4, 2) flattens to C_in = 32.
    B, C, H, W = 2, 4, 4, 2
    C_in = C * H * W          # num_input_features
    L0, L1 = 64, 128          # layers=[L0, L1] (small stand-ins for [1024, 128])

    x = jax.random.normal(ks[0], (B, C, H, W), dtype=jnp.float32)

    # Conv weights stored as (C_in, C_out) for the matmul formulation.
    w1 = jax.random.normal(ks[1], (C_in, L0), dtype=jnp.float32) * 0.1
    w2 = jax.random.normal(ks[2], (L0, L1), dtype=jnp.float32) * 0.1

    # BatchNorm parameters (eval mode; det3d uses eps=1e-3).
    g1 = 1.0 + 0.1 * jax.random.normal(ks[3], (L0,), dtype=jnp.float32)
    be1 = 0.1 * jax.random.normal(ks[4], (L0,), dtype=jnp.float32)
    m1 = 0.1 * jax.random.normal(ks[5], (L0,), dtype=jnp.float32)
    v1 = 0.5 + jnp.abs(jax.random.normal(ks[6], (L0,), dtype=jnp.float32))
    g2 = 1.0 + 0.1 * jax.random.normal(ks[7], (L1,), dtype=jnp.float32)
    be2 = 0.1 * jax.random.normal(ks[8], (L1,), dtype=jnp.float32)
    m2 = 0.1 * jax.random.normal(ks[9], (L1,), dtype=jnp.float32)
    v2 = 0.5 + jnp.abs(jax.random.normal(ks[10], (L1,), dtype=jnp.float32))

    w1f, b1 = fold_bn_into_conv(w1, g1, be1, m1, v1, eps=1e-3)
    w2f, b2 = fold_bn_into_conv(w2, g2, be2, m2, v2, eps=1e-3)

    out = point_module_forward(x, w1f, b1, w2f, b2)
    out = jax.block_until_ready(out)
    assert out.shape == (B, L1, 1, 1)

    # Plain-JAX reference (mirrors the bf16 operand rounding of the kernel).
    x2d_q = x.reshape(B, -1).astype(jnp.bfloat16).astype(jnp.float32)
    w1_q = w1f.astype(jnp.float32)
    w2_q = w2f.astype(jnp.float32)
    h1 = jnp.maximum(x2d_q @ w1_q + b1, 0.0)
    h1_q = h1.astype(jnp.bfloat16).astype(jnp.float32)
    h2 = jnp.maximum(h1_q @ w2_q + b2, 0.0)
    pad = jnp.full((B, 1), -jnp.inf, jnp.float32)
    left = jnp.concatenate([pad, h2[:, :-1]], axis=1)
    right = jnp.concatenate([h2[:, 1:], pad], axis=1)
    ref = jnp.maximum(h2, jnp.maximum(left, right)).reshape(B, L1, 1, 1)

    assert jnp.allclose(out, ref, atol=1e-3, rtol=1e-3), (
        float(jnp.max(jnp.abs(out - ref))))
    print("KERNEL_OK")
</pallas_src>

<mosaic_0001>
module attributes {stable_mosaic.version = 11 : i64} {
  func.func @point_module_kernel(%arg0: i32, %arg1: memref<256x32xbf16, #tpu.memory_space<vmem>>, %arg2: memref<32x64xbf16, #tpu.memory_space<vmem>>, %arg3: memref<1x64xf32, #tpu.memory_space<vmem>>, %arg4: memref<64x128xbf16, #tpu.memory_space<vmem>>, %arg5: memref<1x128xf32, #tpu.memory_space<vmem>>, %arg6: memref<256x128xf32, #tpu.memory_space<vmem>>) attributes {dimension_semantics = [#tpu.dimension_semantics<parallel>], iteration_bounds = array<i64: 1>, scalar_prefetch = 0 : i64, scratch_operands = 0 : i64, tpu.core_type = #tpu.core_type<tc>, window_params = [{transform_indices = @transform_0, window_bounds = array<i64: 256, 32>}, {pipeline_mode = #tpu.pipeline_mode<synchronous>, transform_indices = @transform_1, window_bounds = array<i64: 32, 64>}, {pipeline_mode = #tpu.pipeline_mode<synchronous>, transform_indices = @transform_2, window_bounds = array<i64: 1, 64>}, {pipeline_mode = #tpu.pipeline_mode<synchronous>, transform_indices = @transform_3, window_bounds = array<i64: 64, 128>}, {pipeline_mode = #tpu.pipeline_mode<synchronous>, transform_indices = @transform_4, window_bounds = array<i64: 1, 128>}, {transform_indices = @transform_5, window_bounds = array<i64: 256, 128>}]} {
    %c0 = arith.constant 0 : index
    %c0_0 = arith.constant 0 : index
    %0 = vector.load %arg1[%c0, %c0_0] : memref<256x32xbf16, #tpu.memory_space<vmem>>, vector<256x32xbf16>
    %c0_1 = arith.constant 0 : index
    %c0_2 = arith.constant 0 : index
    %1 = vector.load %arg2[%c0_1, %c0_2] : memref<32x64xbf16, #tpu.memory_space<vmem>>, vector<32x64xbf16>
    %cst = arith.constant dense<0.000000e+00> : vector<256x64xf32>
    %2 = tpu.matmul %0, %1, %cst {dimension_numbers = #tpu.dot_dimension_numbers<[1], [0], [0], [1], [0, 0, 1, 1], [], []>} : vector<256x32xbf16>, vector<32x64xbf16>, vector<256x64xf32> -> vector<256x64xf32>
    %c0_3 = arith.constant 0 : index
    %c0_4 = arith.constant 0 : index
    %3 = vector.load %arg3[%c0_3, %c0_4] : memref<1x64xf32, #tpu.memory_space<vmem>>, vector<1x64xf32>
    %4 = vector.broadcast %3 : vector<1x64xf32> to vector<256x64xf32>
    %5 = arith.addf %2, %4 : vector<256x64xf32>
    %cst_5 = arith.constant 0.000000e+00 : f32
    %6 = vector.broadcast %cst_5 : f32 to vector<256x64xf32>
    %7 = arith.maximumf %5, %6 : vector<256x64xf32>
    %8 = arith.truncf %7 : vector<256x64xf32> to vector<256x64xbf16>
    %c0_6 = arith.constant 0 : index
    %c0_7 = arith.constant 0 : index
    %9 = vector.load %arg4[%c0_6, %c0_7] : memref<64x128xbf16, #tpu.memory_space<vmem>>, vector<64x128xbf16>
    %cst_8 = arith.constant dense<0.000000e+00> : vector<256x128xf32>
    %10 = tpu.matmul %8, %9, %cst_8 {dimension_numbers = #tpu.dot_dimension_numbers<[1], [0], [0], [1], [0, 0, 1, 1], [], []>} : vector<256x64xbf16>, vector<64x128xbf16>, vector<256x128xf32> -> vector<256x128xf32>
    %c0_9 = arith.constant 0 : index
    %c0_10 = arith.constant 0 : index
    %11 = vector.load %arg5[%c0_9, %c0_10] : memref<1x128xf32, #tpu.memory_space<vmem>>, vector<1x128xf32>
    %12 = vector.broadcast %11 : vector<1x128xf32> to vector<256x128xf32>
    %13 = arith.addf %10, %12 : vector<256x128xf32>
    %cst_11 = arith.constant 0.000000e+00 : f32
    %14 = vector.broadcast %cst_11 : f32 to vector<256x128xf32>
    %15 = arith.maximumf %13, %14 : vector<256x128xf32>
    %16 = tpu.iota {dimensions = array<i32: 1>} : vector<1x128xi32>
    %c0_i32 = arith.constant 0 : i32
    %17 = vector.broadcast %c0_i32 : i32 to vector<1x128xi32>
    %18 = arith.cmpi eq, %16, %17 : vector<1x128xi32>
    %c1_i32 = arith.constant 1 : i32
    %19 = tpu.dynamic_rotate %15 by %c1_i32 dim 1 : vector<256x128xf32>, i32 -> vector<256x128xf32>
    %cst_12 = arith.constant 0xFF800000 : f32
    %20 = vector.shape_cast %18 : vector<1x128xi1> to vector<1x128xi1>
    %21 = vector.broadcast %20 : vector<1x128xi1> to vector<256x128xi1>
    %22 = vector.broadcast %cst_12 : f32 to vector<256x128xf32>
    %23 = arith.select %21, %22, %19 : vector<256x128xi1>, vector<256x128xf32>
    %c127_i32 = arith.constant 127 : i32
    %24 = vector.broadcast %c127_i32 : i32 to vector<1x128xi32>
    %25 = arith.cmpi eq, %16, %24 : vector<1x128xi32>
    %c127_i32_13 = arith.constant 127 : i32
    %26 = tpu.dynamic_rotate %15 by %c127_i32_13 dim 1 : vector<256x128xf32>, i32 -> vector<256x128xf32>
    %cst_14 = arith.constant 0xFF800000 : f32
    %27 = vector.shape_cast %25 : vector<1x128xi1> to vector<1x128xi1>
    %28 = vector.broadcast %27 : vector<1x128xi1> to vector<256x128xi1>
    %29 = vector.broadcast %cst_14 : f32 to vector<256x128xf32>
    %30 = arith.select %28, %29, %26 : vector<256x128xi1>, vector<256x128xf32>
    %31 = arith.maximumf %23, %30 : vector<256x128xf32>
    %32 = arith.maximumf %15, %31 : vector<256x128xf32>
    %c0_15 = arith.constant 0 : index
    %c0_16 = arith.constant 0 : index
    %33 = vector.load %arg6[%c0_15, %c0_16] : memref<256x128xf32, #tpu.memory_space<vmem>>, vector<256x128xf32>
    tpu.vector_store %arg6[%c0_15, %c0_16], %32 {strides = array<i32>} : memref<256x128xf32, #tpu.memory_space<vmem>>, vector<256x128xf32>,
    return
  }
  func.func @transform_0(%arg0: i32) -> (i32, i32) {
    %c0_i32 = arith.constant 0 : i32
    %c0_i32_0 = arith.constant 0 : i32
    return %arg0, %c0_i32 : i32, i32
  }
  func.func @transform_1(%arg0: i32) -> (i32, i32) {
    %c0_i32 = arith.constant 0 : i32
    %c0_i32_0 = arith.constant 0 : i32
    %c0_i32_1 = arith.constant 0 : i32
    return %c0_i32, %c0_i32_0 : i32, i32
  }
  func.func @transform_2(%arg0: i32) -> (i32, i32) {
    %c0_i32 = arith.constant 0 : i32
    %c0_i32_0 = arith.constant 0 : i32
    %c0_i32_1 = arith.constant 0 : i32
    return %c0_i32, %c0_i32_0 : i32, i32
  }
  func.func @transform_3(%arg0: i32) -> (i32, i32) {
    %c0_i32 = arith.constant 0 : i32
    %c0_i32_0 = arith.constant 0 : i32
    %c0_i32_1 = arith.constant 0 : i32
    return %c0_i32, %c0_i32_0 : i32, i32
  }
  func.func @transform_4(%arg0: i32) -> (i32, i32) {
    %c0_i32 = arith.constant 0 : i32
    %c0_i32_0 = arith.constant 0 : i32
    %c0_i32_1 = arith.constant 0 : i32
    return %c0_i32, %c0_i32_0 : i32, i32
  }
  func.func @transform_5(%arg0: i32) -> (i32, i32) {
    %c0_i32 = arith.constant 0 : i32
    %c0_i32_0 = arith.constant 0 : i32
    return %arg0, %c0_i32 : i32, i32
  }
}

</mosaic_0001>

<bundles_post_ra>
// kernel: tpu_custom_call.1
= control target key start
LH: loop header
LB: loop body
LE: loop exit
PB: predicated region body
PF: predicated region fallthrough
CT: control target
= control target key end

     0   :  { %vm157_vm0 = vcmask 261120   ;;  %s1807_s0 = inlined_call_operand.vmem [shape: bf16[256,32], index: 0, kind: input, shape index: {}]   ;;  %s1808_s1 = inlined_call_operand.vmem [shape: bf16[32,64], index: 1, kind: input, shape index: {}]   ;;  %s1809_s2 = inlined_call_operand.vmem [shape: f32[1,64], index: 2, kind: input, shape index: {}]   ;;  %s1810_s3 = inlined_call_operand.vmem [shape: bf16[64,128], index: 3, kind: input, shape index: {}]   ;;  %s1811_s4 = inlined_call_operand.vmem [shape: f32[1,128], index: 4, kind: input, shape index: {}]   ;;  %s1812_s5 = inlined_call_operand.hbm [shape: f32[256,128], index: 5, kind: output, shape index: {}]  }
   0x1   :  { %v1183_v0 = vld [vmem:[%s1808_s1] sm:$0xff]   ;;  %v1184_v1 = vld [vmem:[%s1808_s1 + $0x8] sm:$0xff]   ;;  %v1187_v4 = vld [vmem:[%s1807_s0 + $0x10] sm:$0xff]  }
   0x2   :  { %1102 = vmatprep.subr.bf16.mxu0 %v1183_v0  ;;  %v1185_v2 = vld [vmem:[%s1807_s0] sm:$0xff]   ;;  %v1186_v3 = vld [vmem:[%s1807_s0 + $0x8] sm:$0xff]   ;;  %v1188_v5 = vld [vmem:[%s1807_s0 + $0x18] sm:$0xff]  }
   0x3   :  { %1103 = vmatpush3.bf16.msra.mxu0 %v1183_v0  ;;  %1106 = vmatprep.mubr.msk.bf16.mxu0 %vm157_vm0, %v1185_v2  ;;  %v1189_v6 = vld [vmem:[%s1807_s0 + $0x20] sm:$0xff]   ;;  %v1202_v8 = vld [vmem:[%s1810_s3 + $0x8] sm:$0xff]  }
   0x4   :  { %1104 = vmatprep.subr.bf16.mxu0 %v1184_v1  ;;  %v1201_v7 = vld [vmem:[%s1810_s3] sm:$0xff]  }
   0x5   :  { %1138 = vmatprep.subr.bf16.mxu1 %v1201_v7 }
   0x6   :  { %1139 = vmatpush3.bf16.msra.mxu1 %v1201_v7 }
   0x7   :  { %1105 = vmatpush3.bf16.msra.mxu0 %v1184_v1 }
   0xa   :  { %1107 = vmatmul.mubr.msk.bf16.vlgmr.msra.gmra.mrb[0].mxu0 %vm157_vm0, %v1186_v3 }
   0xb   :  { %1110 = vmatprep.mubr.msk.bf16.mxu0 %vm157_vm0, %v1187_v4 }
  0x12   :  { %1111 = vmatmul.mubr.msk.bf16.gmra.mrb[4].mxu0 %vm157_vm0, %v1188_v5 }
  0x13   :  { %1114 = vmatprep.mubr.msk.bf16.mxu0 %vm157_vm0, %v1189_v6 }
  0x14   :  { %10 = vsyncpa [#allocation3], 0  ;;  %v1190_v9 = vld [vmem:[%s1807_s0 + $0x28] sm:$0xff]   ;;  %1140 = vmatprep.subr.bf16.mxu1 %v1202_v8  ;;  %v1191_v10 = vld [vmem:[%s1807_s0 + $0x30] sm:$0xff]   ;;  %vm454_vm1 = vcmask 523264   ;;  %s1230_s12 = smov 1  }
  0x15   :  { %1141 = vmatpush3.bf16.msra.mxu1 %v1202_v8  ;;  %v1192_v11 = vld [vmem:[%s1807_s0 + $0x38] sm:$0xff]   ;;  %v1193_v12 = vld [vmem:[%s1807_s0 + $0x40] sm:$0xff]   ;;  %v1194_v13 = vld [vmem:[%s1807_s0 + $0x48] sm:$0xff]  }
  0x16   :  { %v1195_v14 = vld [vmem:[%s1807_s0 + $0x50] sm:$0xff]   ;;  %v1196_v15 = vld [vmem:[%s1807_s0 + $0x58] sm:$0xff]   ;;  %v1197_v16 = vld [vmem:[%s1807_s0 + $0x60] sm:$0xff]  }
  0x17   :  { %v1198_v17 = vld [vmem:[%s1807_s0 + $0x68] sm:$0xff]   ;;  %v1199_v18 = vld [vmem:[%s1807_s0 + $0x70] sm:$0xff]   ;;  %v1200_v19 = vld [vmem:[%s1807_s0 + $0x78] sm:$0xff]  }
  0x18   :  { %v1203_v20 = vld [vmem:[%s1810_s3 + $0x10] sm:$0xff]   ;;  %v1204_v21 = vld [vmem:[%s1810_s3 + $0x18] sm:$0xff]   ;;  %v1349_v22 = vld [vmem:[%s1809_s2] ss:$0 sm:$0xff]  ;;  %s1229_s3 = smov 127  }
  0x19   :  { %1142 = vmatprep.subr.bf16.mxu1 %v1203_v20 }
  0x1a   :  { %1115 = vmatmul.mubr.msk.bf16.gmra.mrb[8].mxu0 %vm157_vm0, %v1190_v9  ;;  %1143 = vmatpush3.bf16.msra.mxu1 %v1203_v20 }
  0x1b   :  { %1118 = vmatprep.mubr.msk.bf16.mxu0 %vm157_vm0, %v1191_v10  ;;  %1144 = vmatprep.subr.bf16.mxu1 %v1204_v21 }
  0x1e   :  { %1145 = vmatpush3.bf16.msra.mxu1 %v1204_v21 }
  0x22   :  { %1119 = vmatmul.mubr.msk.bf16.gmra.mrb[12].mxu0 %vm157_vm0, %v1192_v11 }
  0x23   :  { %1122 = vmatprep.mubr.msk.bf16.mxu0 %vm157_vm0, %v1193_v12 }
  0x2a   :  { %1123 = vmatmul.mubr.msk.bf16.gmra.mrb[16].mxu0 %vm157_vm0, %v1194_v13 }
  0x2b   :  { %1126 = vmatprep.mubr.msk.bf16.mxu0 %vm157_vm0, %v1195_v14 }
  0x32   :  { %1127 = vmatmul.mubr.msk.bf16.gmra.mrb[20].mxu0 %vm157_vm0, %v1196_v15 }
  0x33   :  { %1130 = vmatprep.mubr.msk.bf16.mxu0 %vm157_vm0, %v1197_v16 }
  0x3a   :  { %1131 = vmatmul.mubr.msk.bf16.gmra.mrb[24].mxu0 %vm157_vm0, %v1198_v17 }
  0x3b   :  { %1134 = vmatprep.mubr.msk.bf16.mxu0 %vm157_vm0, %v1199_v18 }
  0x42   :  { %1135 = vmatmul.mubr.msk.bf16.gmra.mrb[28].mxu0 %vm157_vm0, %v1200_v19 }
  0xdd   :  { %v1108_v23 = vpop.f32.mrb[0].mxu0 }
  0xde   :  { %v249_v24 = vadd.f32 %v1108_v23, %v1349_v22  ;;  %v240_v25 = vpop.f32.mrb[1].mxu0 }
  0xdf   :  { %v241_v26 = vadd.f32 %v1349_v22, %v240_v25  ;;  %v1109_v27 = vpop.f32.mrb[2].mxu0 }
  0xe0   :  { %v252_v28 = vadd.f32 %v1109_v27, %v1349_v22  ;;  %v243_v29 = vpop.f32.mrb[3].mxu0  ;;  %v369_v31 = vmax.f32 %v249_v24, 0.0 }
  0xe1   :  { %v244_v30 = vadd.f32 %v1349_v22, %v243_v29  ;;  %v367_v33 = vmax.f32 %v241_v26, 0.0 }
  0xe2   :  { %v370_v32 = vmax.f32 %v252_v28, 0.0 }
  0xe3   :  { %v368_v34 = vmax.f32 %v244_v30, 0.0 }
  0xe4   :  { %v400_v35 = vpack.c.bf16 %v370_v32, %v369_v31 }
  0xe5   :  { %v1112_v36 = vpop.f32.mrb[4].mxu0  ;;  %v399_v37 = vpack.c.bf16 %v368_v34, %v367_v33 }
  0xe6   :  { %v265_v38 = vadd.f32 %v1112_v36, %v1349_v22  ;;  %v256_v39 = vpop.f32.mrb[5].mxu0 }
  0xe7   :  { %v257_v40 = vadd.f32 %v1349_v22, %v256_v39  ;;  %v1113_v41 = vpop.f32.mrb[6].mxu0  ;;  %1146 = vmatprep.mubr.msk.bf16.mxu1 %vm454_vm1, %v399_v37 }
  0xe8   :  { %v373_v42 = vmax.f32 %v265_v38, 0.0  ;;  %v268_v43 = vadd.f32 %v1113_v41, %v1349_v22  ;;  %v259_v44 = vpop.f32.mrb[7].mxu0  ;;  %1147 = vmatmul.mubr.msk.bf16.vlgmr.msra.gmra.mrb[0].mxu1 %vm454_vm1, %v400_v35 }
  0xe9   :  { %v371_v45 = vmax.f32 %v257_v40, 0.0  ;;  %v260_v46 = vadd.f32 %v1349_v22, %v259_v44 }
  0xea   :  { %v374_v47 = vmax.f32 %v268_v43, 0.0 }
  0xeb   :  { %v372_v48 = vmax.f32 %v260_v46, 0.0 }
  0xec   :  { %v402_v49 = vpack.c.bf16 %v374_v47, %v373_v42 }
  0xed   :  { %v401_v50 = vpack.c.bf16 %v372_v48, %v371_v45  ;;  %v1116_v51 = vpop.f32.mrb[8].mxu0 }
  0xee   :  { %v281_v52 = vadd.f32 %v1116_v51, %v1349_v22  ;;  %v272_v53 = vpop.f32.mrb[9].mxu0 }
  0xef   :  { %1150 = vmatprep.mubr.msk.bf16.mxu1 %vm454_vm1, %v401_v50  ;;  %v273_v54 = vadd.f32 %v1349_v22, %v272_v53  ;;  %v1117_v55 = vpop.f32.mrb[10].mxu0 }
  0xf0   :  { %1151 = vmatmul.mubr.msk.bf16.gmra.mrb[4].mxu1 %vm454_vm1, %v402_v49  ;;  %v377_v56 = vmax.f32 %v281_v52, 0.0  ;;  %v284_v57 = vadd.f32 %v1117_v55, %v1349_v22  ;;  %v275_v58 = vpop.f32.mrb[11].mxu0 }
  0xf1   :  { %v375_v59 = vmax.f32 %v273_v54, 0.0  ;;  %v276_v60 = vadd.f32 %v1349_v22, %v275_v58 }
  0xf2   :  { %v378_v61 = vmax.f32 %v284_v57, 0.0 }
  0xf3   :  { %v376_v62 = vmax.f32 %v276_v60, 0.0 }
  0xf4   :  { %v404_v63 = vpack.c.bf16 %v378_v61, %v377_v56 }
  0xf5   :  { %v403_v0 = vpack.c.bf16 %v376_v62, %v375_v59  ;;  %v1120_v1 = vpop.f32.mrb[12].mxu0 }
  0xf6   :  { %v297_v2 = vadd.f32 %v1120_v1, %v1349_v22  ;;  %v288_v3 = vpop.f32.mrb[13].mxu0 }
  0xf7   :  { %1154 = vmatprep.mubr.msk.bf16.mxu1 %vm454_vm1, %v403_v0  ;;  %v289_v4 = vadd.f32 %v1349_v22, %v288_v3  ;;  %v1121_v5 = vpop.f32.mrb[14].mxu0 }
  0xf8   :  { %1155 = vmatmul.mubr.msk.bf16.gmra.mrb[8].mxu1 %vm454_vm1, %v404_v63  ;;  %v381_v6 = vmax.f32 %v297_v2, 0.0  ;;  %v300_v7 = vadd.f32 %v1121_v5, %v1349_v22  ;;  %v291_v8 = vpop.f32.mrb[15].mxu0 }
  0xf9   :  { %v379_v9 = vmax.f32 %v289_v4, 0.0  ;;  %v292_v10 = vadd.f32 %v1349_v22, %v291_v8  ;;  %v1402_v8 = vld [vmem:[%s1811_s4] ss:$0 sm:$0xff]  ;;  %s1231_s4 = smov [#allocation2]  }
  0xfa   :  { %v382_v11 = vmax.f32 %v300_v7, 0.0  ;;  %s997_s13 = sshll.u32 %s1231_s4, 4  ;;  %s998_s13 = int_to_ptr.vmem [resolvable:$true] %s997_s13 }
  0xfb   :  { %v380_v12 = vmax.f32 %v292_v10, 0.0  ;;  %s1205_s14 = scalar_lea.vmem %s998_s13, 4096  ;;  %p1210_p1 = scmp.lt.s32.totalorder %s998_s13, %s998_s13 }
  0xfc   :  { %v406_v13 = vpack.c.bf16 %v382_v11, %v381_v6  ;;  %p1206_p0 = scmp.ne.s32.totalorder %s998_s13, %s1205_s14  ;;  %p1211_p2 = scmp.lt.s32.totalorder %s1205_s14, %s1205_s14 }
  0xfd   :  { %v405_v14 = vpack.c.bf16 %v380_v12, %v379_v9  ;;  %v1124_v15 = vpop.f32.mrb[16].mxu0 }
  0xfe   :  { %v313_v16 = vadd.f32 %v1124_v15, %v1349_v22  ;;  %v304_v17 = vpop.f32.mrb[17].mxu0  ;;  %p1212_p3 = por %p1211_p2, %p1210_p1 }
  0xff   :  { %1158 = vmatprep.mubr.msk.bf16.mxu1 %vm454_vm1, %v405_v14  ;;  %v305_v18 = vadd.f32 %v1349_v22, %v304_v17  ;;  %v1125_v19 = vpop.f32.mrb[18].mxu0 }
 0x100   :  { %1159 = vmatmul.mubr.msk.bf16.gmra.mrb[12].mxu1 %vm454_vm1, %v406_v13  ;;  %v385_v20 = vmax.f32 %v313_v16, 0.0  ;;  %v316_v21 = vadd.f32 %v1125_v19, %v1349_v22  ;;  %v307_v23 = vpop.f32.mrb[19].mxu0  ;;  %p1213_p4 = pnand %p1212_p3, %p1206_p0 }
 0x101   :  { %v383_v24 = vmax.f32 %v305_v18, 0.0  ;;  %v308_v25 = vadd.f32 %v1349_v22, %v307_v23 }
 0x102   :  { %v386_v26 = vmax.f32 %v316_v21, 0.0 }
 0x103   :  { %v384_v27 = vmax.f32 %v308_v25, 0.0 }
 0x104   :  { %v408_v28 = vpack.c.bf16 %v386_v26, %v385_v20 }
 0x105   :  { %v407_v29 = vpack.c.bf16 %v384_v27, %v383_v24  ;;  %v1128_v30 = vpop.f32.mrb[20].mxu0 }
 0x106   :  { %v329_v31 = vadd.f32 %v1128_v30, %v1349_v22  ;;  %v320_v32 = vpop.f32.mrb[21].mxu0 }
 0x107   :  { %1162 = vmatprep.mubr.msk.bf16.mxu1 %vm454_vm1, %v407_v29  ;;  %v321_v33 = vadd.f32 %v1349_v22, %v320_v32  ;;  %v1129_v34 = vpop.f32.mrb[22].mxu0 }
 0x108   :  { %1163 = vmatmul.mubr.msk.bf16.gmra.mrb[16].mxu1 %vm454_vm1, %v408_v28  ;;  %v389_v35 = vmax.f32 %v329_v31, 0.0  ;;  %v332_v36 = vadd.f32 %v1129_v34, %v1349_v22  ;;  %v323_v37 = vpop.f32.mrb[23].mxu0 }
 0x109   :  { %v387_v38 = vmax.f32 %v321_v33, 0.0  ;;  %v324_v39 = vadd.f32 %v1349_v22, %v323_v37 }
 0x10a   :  { %v390_v40 = vmax.f32 %v332_v36, 0.0 }
 0x10b   :  { %v388_v41 = vmax.f32 %v324_v39, 0.0 }
 0x10c   :  { %v410_v42 = vpack.c.bf16 %v390_v40, %v389_v35 }
 0x10d   :  { %v409_v43 = vpack.c.bf16 %v388_v41, %v387_v38  ;;  %v1132_v44 = vpop.f32.mrb[24].mxu0 }
 0x10e   :  { %v345_v45 = vadd.f32 %v1132_v44, %v1349_v22  ;;  %v336_v46 = vpop.f32.mrb[25].mxu0 }
 0x10f   :  { %1166 = vmatprep.mubr.msk.bf16.mxu1 %vm454_vm1, %v409_v43  ;;  %v337_v47 = vadd.f32 %v1349_v22, %v336_v46  ;;  %v1133_v48 = vpop.f32.mrb[26].mxu0 }
 0x110   :  { %1167 = vmatmul.mubr.msk.bf16.gmra.mrb[20].mxu1 %vm454_vm1, %v410_v42  ;;  %v393_v49 = vmax.f32 %v345_v45, 0.0  ;;  %v348_v50 = vadd.f32 %v1133_v48, %v1349_v22  ;;  %v339_v51 = vpop.f32.mrb[27].mxu0 }
 0x111   :  { %v391_v52 = vmax.f32 %v337_v47, 0.0  ;;  %v340_v53 = vadd.f32 %v1349_v22, %v339_v51 }
 0x112   :  { %v394_v54 = vmax.f32 %v348_v50, 0.0 }
 0x113   :  { %v392_v55 = vmax.f32 %v340_v53, 0.0 }
 0x114   :  { %v412_v56 = vpack.c.bf16 %v394_v54, %v393_v49 }
 0x115   :  { %v411_v57 = vpack.c.bf16 %v392_v55, %v391_v52  ;;  %v1136_v58 = vpop.f32.mrb[28].mxu0 }
 0x116   :  { %v361_v59 = vadd.f32 %v1136_v58, %v1349_v22  ;;  %v352_v60 = vpop.f32.mrb[29].mxu0 }
 0x117   :  { %1170 = vmatprep.mubr.msk.bf16.mxu1 %vm454_vm1, %v411_v57  ;;  %v353_v61 = vadd.f32 %v1349_v22, %v352_v60  ;;  %v1137_v62 = vpop.f32.mrb[30].mxu0 }
 0x118   :  { %1171 = vmatmul.mubr.msk.bf16.gmra.mrb[24].mxu1 %vm454_vm1, %v412_v56  ;;  %v397_v63 = vmax.f32 %v361_v59, 0.0  ;;  %v364_v0 = vadd.f32 %v1137_v62, %v1349_v22  ;;  %v355_v1 = vpop.f32.mrb[31].mxu0 }
 0x119   :  { %v395_v2 = vmax.f32 %v353_v61, 0.0  ;;  %v356_v3 = vadd.f32 %v1349_v22, %v355_v1 }
 0x11a   :  { %v398_v4 = vmax.f32 %v364_v0, 0.0 }
 0x11b   :  { %v396_v5 = vmax.f32 %v356_v3, 0.0 }
 0x11c   :  { %v414_v6 = vpack.c.bf16 %v398_v4, %v397_v63 }
 0x11d   :  { %v413_v7 = vpack.c.bf16 %v396_v5, %v395_v2 }
 0x11f   :  { %1174 = vmatprep.mubr.msk.bf16.mxu1 %vm454_vm1, %v413_v7 }
 0x120   :  { %1175 = vmatmul.mubr.msk.bf16.gmra.mrb[28].mxu1 %vm454_vm1, %v414_v6 }
 0x1bb   :  { %v1148_v9 = vpop.f32.mrb[0].mxu1 }
 0x1bc   :  { %v546_v10 = vadd.f32 %v1148_v9, %v1402_v8  ;;  %v537_v11 = vpop.f32.mrb[1].mxu1 }
 0x1bd   :  { %v1149_v12 = vpop.f32.mrb[2].mxu1  ;;  %v538_v22 = vadd.f32 %v1402_v8, %v537_v11 }
 0x1be   :  { %v1405_v13 = vmax.f32 %v546_v10, 0.0  ;;  %v549_v14 = vadd.f32 %v1149_v12, %v1402_v8  ;;  %v540_v15 = vpop.f32.mrb[3].mxu1 }
 0x1bf   :  { %v1413_v16 = vmax.f32 %v538_v22, 0.0  ;;  %v541_v21 = vadd.f32 %v1402_v8, %v540_v15 }
 0x1c0   :  { %802 = vrot.lane.b32.xlu0 %v1405_v13, %s1229_s3  ;;  %703 = vrot.lane.b32.xlu1 %v1405_v13, %s1230_s12  ;;  %v1415_v17 = vmax.f32 %v549_v14, 0.0 }
 0x1c1   :  { %v1426_v24 = vmax.f32 %v541_v21, 0.0 }
 0x1c3   :  { %v1152_v18 = vpop.f32.mrb[4].mxu1 }
 0x1c4   :  { %705 = vrot.lane.b32.xlu1 %v1415_v17, %s1230_s12  ;;  %v553_v19 = vpop.f32.mrb[5].mxu1  ;;  %699 = vrot.lane.b32.xlu0 %v1413_v16, %s1230_s12  ;;  %v562_v25 = vadd.f32 %v1152_v18, %v1402_v8 }
 0x1c5   :  { %v1153_v20 = vpop.f32.mrb[6].mxu1  ;;  %v554_v33 = vadd.f32 %v1402_v8, %v553_v19 }
 0x1c6   :  { %v556_v23 = vpop.f32.mrb[7].mxu1  ;;  %v565_v26 = vadd.f32 %v1153_v20, %v1402_v8  ;;  %v1434_v30 = vmax.f32 %v562_v25, 0.0 }
 0x1c7   :  { %v557_v34 = vadd.f32 %v1402_v8, %v556_v23  ;;  %v1448_v38 = vmax.f32 %v554_v33, 0.0 }
 0x1c8   :  { %804 = vrot.lane.b32.xlu1 %v1415_v17, %s1229_s3  ;;  %798 = vrot.lane.b32.xlu0 %v1413_v16, %s1229_s3  ;;  %v1436_v31 = vmax.f32 %v565_v26, 0.0 }
 0x1c9   :  { %v1450_v39 = vmax.f32 %v557_v34, 0.0 }
 0x1cb   :  { %v1156_v27 = vpop.f32.mrb[8].mxu1 }
 0x1cc   :  { %800 = vrot.lane.b32.xlu1 %v1426_v24, %s1229_s3  ;;  %701 = vrot.lane.b32.xlu0 %v1426_v24, %s1230_s12  ;;  %v569_v28 = vpop.f32.mrb[9].mxu1  ;;  %v578_v41 = vadd.f32 %v1156_v27, %v1402_v8 }
 0x1cd   :  { %v1157_v29 = vpop.f32.mrb[10].mxu1  ;;  %v570_v53 = vadd.f32 %v1402_v8, %v569_v28 }
 0x1ce   :  { %v572_v32 = vpop.f32.mrb[11].mxu1  ;;  %v581_v42 = vadd.f32 %v1157_v29, %v1402_v8  ;;  %v1466_v48 = vmax.f32 %v578_v41, 0.0 }
 0x1cf   :  { %v573_v54 = vadd.f32 %v1402_v8, %v572_v32  ;;  %v1484_v60 = vmax.f32 %v570_v53, 0.0 }
 0x1d0   :  { %713 = vrot.lane.b32.xlu1 %v1436_v31, %s1230_s12  ;;  %711 = vrot.lane.b32.xlu0 %v1434_v30, %s1230_s12  ;;  %v1468_v49 = vmax.f32 %v581_v42, 0.0 }
 0x1d1   :  { %v1486_v61 = vmax.f32 %v573_v54, 0.0 }
 0x1d3   :  { %v1160_v35 = vpop.f32.mrb[12].mxu1 }
 0x1d4   :  { %812 = vrot.lane.b32.xlu1 %v1436_v31, %s1229_s3  ;;  %810 = vrot.lane.b32.xlu0 %v1434_v30, %s1229_s3  ;;  %v585_v36 = vpop.f32.mrb[13].mxu1  ;;  %v594_v1 = vadd.f32 %v1160_v35, %v1402_v8 }
 0x1d5   :  { %v1161_v37 = vpop.f32.mrb[14].mxu1  ;;  %v586_v14 = vadd.f32 %v1402_v8, %v585_v36 }
 0x1d6   :  { %v588_v40 = vpop.f32.mrb[15].mxu1  ;;  %v597_v2 = vadd.f32 %v1161_v37, %v1402_v8  ;;  %v1502_v9 = vmax.f32 %v594_v1, 0.0 }
 0x1d7   :  { %v589_v15 = vadd.f32 %v1402_v8, %v588_v40  ;;  %v1520_v25 = vmax.f32 %v586_v14, 0.0 }
 0x1d8   :  { %709 = vrot.lane.b32.xlu1 %v1450_v39, %s1230_s12  ;;  %707 = vrot.lane.b32.xlu0 %v1448_v38, %s1230_s12  ;;  %v1504_v10 = vmax.f32 %v597_v2, 0.0 }
 0x1d9   :  { %v1522_v26 = vmax.f32 %v589_v15, 0.0 }
 0x1db   :  { %v1164_v43 = vpop.f32.mrb[16].mxu1 }
 0x1dc   :  { %808 = vrot.lane.b32.xlu1 %v1450_v39, %s1229_s3  ;;  %806 = vrot.lane.b32.xlu0 %v1448_v38, %s1229_s3  ;;  %v610_v44 = vadd.f32 %v1164_v43, %v1402_v8  ;;  %v601_v45 = vpop.f32.mrb[17].mxu1 }
 0x1dd   :  { %v1464_v46 = vadd.f32 %v1402_v8, %v601_v45  ;;  %v1165_v47 = vpop.f32.mrb[18].mxu1  ;;  %v696_v45 = vlaneseq }
 0x1de   :  { %v613_v50 = vadd.f32 %v1165_v47, %v1402_v8  ;;  %v604_v51 = vpop.f32.mrb[19].mxu1  ;;  %v1534_v32 = vmax.f32 %v610_v44, 0.0 }
 0x1df   :  { %v605_v52 = vadd.f32 %v1402_v8, %v604_v51 }
 0x1e0   :  { %721 = vrot.lane.b32.xlu1 %v1468_v49, %s1230_s12  ;;  %719 = vrot.lane.b32.xlu0 %v1466_v48, %s1230_s12  ;;  %v1536_v33 = vmax.f32 %v613_v50, 0.0 }
 0x1e1   :  { %v1549_v34 = vmax.f32 %v605_v52, 0.0 }
 0x1e3   :  { %v1168_v55 = vpop.f32.mrb[20].mxu1 }
 0x1e4   :  { %820 = vrot.lane.b32.xlu1 %v1468_v49, %s1229_s3  ;;  %818 = vrot.lane.b32.xlu0 %v1466_v48, %s1229_s3  ;;  %v626_v56 = vadd.f32 %v1168_v55, %v1402_v8  ;;  %v617_v57 = vpop.f32.mrb[21].mxu1 }
 0x1e5   :  { %v618_v58 = vadd.f32 %v1402_v8, %v617_v57  ;;  %v1169_v59 = vpop.f32.mrb[22].mxu1 }
 0x1e6   :  { %v629_v62 = vadd.f32 %v1169_v59, %v1402_v8  ;;  %v620_v63 = vpop.f32.mrb[23].mxu1  ;;  %v1559_v35 = vmax.f32 %v626_v56, 0.0 }
 0x1e7   :  { %v621_v0 = vadd.f32 %v1402_v8, %v620_v63  ;;  %v1571_v37 = vmax.f32 %v618_v58, 0.0 }
 0x1e8   :  { %717 = vrot.lane.b32.xlu1 %v1486_v61, %s1230_s12  ;;  %715 = vrot.lane.b32.xlu0 %v1484_v60, %s1230_s12  ;;  %v1561_v36 = vmax.f32 %v629_v62, 0.0 }
 0x1e9   :  { %v1573_v40 = vmax.f32 %v621_v0, 0.0 }
 0x1eb   :  { %v1172_v3 = vpop.f32.mrb[24].mxu1 }
 0x1ec   :  { %816 = vrot.lane.b32.xlu1 %v1486_v61, %s1229_s3  ;;  %814 = vrot.lane.b32.xlu0 %v1484_v60, %s1229_s3  ;;  %v642_v4 = vadd.f32 %v1172_v3, %v1402_v8  ;;  %v633_v5 = vpop.f32.mrb[25].mxu1 }
 0x1ed   :  { %v634_v6 = vadd.f32 %v1402_v8, %v633_v5  ;;  %v1173_v7 = vpop.f32.mrb[26].mxu1 }
 0x1ee   :  { %v645_v11 = vadd.f32 %v1173_v7, %v1402_v8  ;;  %v636_v12 = vpop.f32.mrb[27].mxu1  ;;  %v1583_v41 = vmax.f32 %v642_v4, 0.0 }
 0x1ef   :  { %v637_v22 = vadd.f32 %v1402_v8, %v636_v12  ;;  %v1595_v43 = vmax.f32 %v634_v6, 0.0 }
 0x1f0   :  { %729 = vrot.lane.b32.xlu1 %v1504_v10, %s1230_s12  ;;  %727 = vrot.lane.b32.xlu0 %v1502_v9, %s1230_s12  ;;  %v1585_v42 = vmax.f32 %v645_v11, 0.0 }
 0x1f1   :  { %v1597_v44 = vmax.f32 %v637_v22, 0.0 }
 0x1f3   :  { %v1176_v18 = vpop.f32.mrb[28].mxu1 }
 0x1f4   :  { %828 = vrot.lane.b32.xlu1 %v1504_v10, %s1229_s3  ;;  %826 = vrot.lane.b32.xlu0 %v1502_v9, %s1229_s3  ;;  %v658_v19 = vadd.f32 %v1176_v18, %v1402_v8  ;;  %v649_v20 = vpop.f32.mrb[29].mxu1 }
 0x1f5   :  { %v650_v21 = vadd.f32 %v1402_v8, %v649_v20  ;;  %v1177_v23 = vpop.f32.mrb[30].mxu1 }
 0x1f6   :  { %v661_v27 = vadd.f32 %v1177_v23, %v1402_v8  ;;  %v652_v28 = vpop.f32.mrb[31].mxu1  ;;  %v1609_v47 = vmax.f32 %v658_v19, 0.0 }
 0x1f7   :  { %v653_v29 = vadd.f32 %v1402_v8, %v652_v28  ;;  %v1547_v8 = vmax.f32 %v1464_v46, 0.0  ;;  %v1607_v46 = vand.u32 127, %v696_v45  ;;  %v1619_v51 = vmax.f32 %v650_v21, 0.0 }
 0x1f8   :  { %725 = vrot.lane.b32.xlu1 %v1522_v26, %s1230_s12  ;;  %723 = vrot.lane.b32.xlu0 %v1520_v25, %s1230_s12  ;;  %v1611_v50 = vmax.f32 %v661_v27, 0.0 }
 0x1f9   :  { %vm797_vm2 = vcmp.eq.s32.totalorder %v1607_v46, 127  ;;  %vm698_vm3 = vcmp.eq.s32.totalorder %v1607_v46, 0  ;;  %v1621_v52 = vmax.f32 %v653_v29, 0.0 }
 0x1fc   :  { %824 = vrot.lane.b32.xlu1 %v1522_v26, %s1229_s3  ;;  %822 = vrot.lane.b32.xlu0 %v1520_v25, %s1229_s3 }
 0x200   :  { %737 = vrot.lane.b32.xlu1 %v1536_v33, %s1230_s12  ;;  %735 = vrot.lane.b32.xlu0 %v1534_v32, %s1230_s12 }
 0x204   :  { %836 = vrot.lane.b32.xlu1 %v1536_v33, %s1229_s3  ;;  %834 = vrot.lane.b32.xlu0 %v1534_v32, %s1229_s3 }
 0x208   :  { %733 = vrot.lane.b32.xlu1 %v1549_v34, %s1230_s12  ;;  %731 = vrot.lane.b32.xlu0 %v1547_v8, %s1230_s12 }
 0x20c   :  { %832 = vrot.lane.b32.xlu1 %v1549_v34, %s1229_s3  ;;  %830 = vrot.lane.b32.xlu0 %v1547_v8, %s1229_s3 }
 0x210   :  { %745 = vrot.lane.b32.xlu1 %v1561_v36, %s1230_s12  ;;  %743 = vrot.lane.b32.xlu0 %v1559_v35, %s1230_s12 }
 0x214   :  { %844 = vrot.lane.b32.xlu1 %v1561_v36, %s1229_s3  ;;  %842 = vrot.lane.b32.xlu0 %v1559_v35, %s1229_s3 }
 0x218   :  { %741 = vrot.lane.b32.xlu1 %v1573_v40, %s1230_s12  ;;  %739 = vrot.lane.b32.xlu0 %v1571_v37, %s1230_s12 }
 0x21c   :  { %840 = vrot.lane.b32.xlu1 %v1573_v40, %s1229_s3  ;;  %838 = vrot.lane.b32.xlu0 %v1571_v37, %s1229_s3 }
 0x220   :  { %753 = vrot.lane.b32.xlu1 %v1585_v42, %s1230_s12  ;;  %751 = vrot.lane.b32.xlu0 %v1583_v41, %s1230_s12 }
 0x224   :  { %852 = vrot.lane.b32.xlu1 %v1585_v42, %s1229_s3  ;;  %850 = vrot.lane.b32.xlu0 %v1583_v41, %s1229_s3 }
 0x228   :  { %749 = vrot.lane.b32.xlu1 %v1597_v44, %s1230_s12  ;;  %747 = vrot.lane.b32.xlu0 %v1595_v43, %s1230_s12 }
 0x22c   :  { %848 = vrot.lane.b32.xlu1 %v1597_v44, %s1229_s3  ;;  %846 = vrot.lane.b32.xlu0 %v1595_v43, %s1229_s3 }
 0x230   :  { %761 = vrot.lane.b32.xlu1 %v1611_v50, %s1230_s12  ;;  %759 = vrot.lane.b32.xlu0 %v1609_v47, %s1230_s12 }
 0x232   :  { %v803_v53 = vpop.permute.xlu0 %802  ;;  %v704_v54 = vpop.permute.xlu1 %703 }
 0x233   :  { %v866_v55 = vsel %vm797_vm2, -inf, %v803_v53  ;;  %v767_v56 = vsel %vm698_vm3, -inf, %v704_v54 }
 0x234   :  { %v898_v57 = vmax.f32 %v767_v56, %v866_v55  ;;  %757 = vrot.lane.b32.xlu1 %v1621_v52, %s1230_s12  ;;  %755 = vrot.lane.b32.xlu0 %v1619_v51, %s1230_s12 }
 0x236   :  { %v930_v58 = vmax.f32 %v1405_v13, %v898_v57  ;;  %v706_v59 = vpop.permute.xlu1 %705  ;;  %v700_v62 = vpop.permute.xlu0 %699 }
 0x237   :  { %v768_v1 = vsel %vm698_vm3, -inf, %v706_v59  ;;  %v765_v2 = vsel %vm698_vm3, -inf, %v700_v62 }
 0x238   :  { %962 = vst [vmem:[#allocation2 + $0x10] sm:$0xff] %v930_v58  ;;  %856 = vrot.lane.b32.xlu1 %v1621_v52, %s1229_s3  ;;  %854 = vrot.lane.b32.xlu0 %v1619_v51, %s1229_s3 }
 0x23a   :  { %v805_v63 = vpop.permute.xlu1 %804  ;;  %v799_v0 = vpop.permute.xlu0 %798 }
 0x23b   :  { %v867_v13 = vsel %vm797_vm2, -inf, %v805_v63  ;;  %v864_v3 = vsel %vm797_vm2, -inf, %v799_v0 }
 0x23c   :  { %v899_v4 = vmax.f32 %v768_v1, %v867_v13  ;;  %v896_v5 = vmax.f32 %v765_v2, %v864_v3  ;;  %860 = vrot.lane.b32.xlu1 %v1611_v50, %s1229_s3  ;;  %858 = vrot.lane.b32.xlu0 %v1609_v47, %s1229_s3 }
 0x23e   :  { %v931_v6 = vmax.f32 %v1415_v17, %v899_v4  ;;  %v928_v7 = vmax.f32 %v1413_v16, %v896_v5  ;;  %v801_v11 = vpop.permute.xlu1 %800  ;;  %v702_v12 = vpop.permute.xlu0 %701 }
 0x23f   :  { %v865_v22 = vsel %vm797_vm2, -inf, %v801_v11  ;;  %v766_v14 = vsel %vm698_vm3, -inf, %v702_v12 }
 0x240   :  { %963 = vst [vmem:[#allocation2 + $0x18] sm:$0xff] %v931_v6  ;;  %960 = vst [vmem:[#allocation2] sm:$0xff] %v928_v7  ;;  %v897_v15 = vmax.f32 %v766_v14, %v865_v22 }
 0x242   :  { %v929_v18 = vmax.f32 %v1426_v24, %v897_v15  ;;  %v714_v19 = vpop.permute.xlu1 %713  ;;  %v712_v20 = vpop.permute.xlu0 %711 }
 0x243   :  { %v772_v16 = vsel %vm698_vm3, -inf, %v714_v19  ;;  %v771_v23 = vsel %vm698_vm3, -inf, %v712_v20 }
 0x244   :  { %961 = vst [vmem:[#allocation2 + $0x8] sm:$0xff] %v929_v18 }
 0x246   :  { %v813_v21 = vpop.permute.xlu1 %812  ;;  %v811_v17 = vpop.permute.xlu0 %810 }
 0x247   :  { %v871_v27 = vsel %vm797_vm2, -inf, %v813_v21  ;;  %v870_v28 = vsel %vm797_vm2, -inf, %v811_v17 }
 0x248   :  { %v903_v29 = vmax.f32 %v772_v16, %v871_v27  ;;  %v902_v45 = vmax.f32 %v771_v23, %v870_v28 }
 0x24a   :  { %v935_v24 = vmax.f32 %v1436_v31, %v903_v29  ;;  %v934_v53 = vmax.f32 %v1434_v30, %v902_v45  ;;  %v710_v54 = vpop.permute.xlu1 %709  ;;  %v708_v55 = vpop.permute.xlu0 %707 }
 0x24b   :  { %v770_v58 = vsel %vm698_vm3, -inf, %v710_v54  ;;  %v769_v59 = vsel %vm698_vm3, -inf, %v708_v55 }
 0x24c   :  { %967 = vst [vmem:[#allocation2 + $0x38] sm:$0xff] %v935_v24  ;;  %966 = vst [vmem:[#allocation2 + $0x30] sm:$0xff] %v934_v53 }
 0x24e   :  { %v809_v56 = vpop.permute.xlu1 %808  ;;  %v807_v57 = vpop.permute.xlu0 %806 }
 0x24f   :  { %v869_v62 = vsel %vm797_vm2, -inf, %v809_v56  ;;  %v868_v31 = vsel %vm797_vm2, -inf, %v807_v57 }
 0x250   :  { %v901_v63 = vmax.f32 %v770_v58, %v869_v62  ;;  %v900_v30 = vmax.f32 %v769_v59, %v868_v31 }
 0x252   :  { %v933_v0 = vmax.f32 %v1450_v39, %v901_v63  ;;  %v932_v1 = vmax.f32 %v1448_v38, %v900_v30  ;;  %v722_v2 = vpop.permute.xlu1 %721  ;;  %v720_v13 = vpop.permute.xlu0 %719 }
 0x253   :  { %v776_v5 = vsel %vm698_vm3, -inf, %v722_v2  ;;  %v775_v6 = vsel %vm698_vm3, -inf, %v720_v13 }
 0x254   :  { %965 = vst [vmem:[#allocation2 + $0x28] sm:$0xff] %v933_v0  ;;  %964 = vst [vmem:[#allocation2 + $0x20] sm:$0xff] %v932_v1 }
 0x256   :  { %v821_v3 = vpop.permute.xlu1 %820  ;;  %v819_v4 = vpop.permute.xlu0 %818 }
 0x257   :  { %v875_v7 = vsel %vm797_vm2, -inf, %v821_v3  ;;  %v874_v39 = vsel %vm797_vm2, -inf, %v819_v4 }
 0x258   :  { %v907_v11 = vmax.f32 %v776_v5, %v875_v7  ;;  %v906_v38 = vmax.f32 %v775_v6, %v874_v39 }
 0x25a   :  { %v939_v12 = vmax.f32 %v1468_v49, %v907_v11  ;;  %v938_v22 = vmax.f32 %v1466_v48, %v906_v38  ;;  %v718_v14 = vpop.permute.xlu1 %717  ;;  %v716_v15 = vpop.permute.xlu0 %715 }
 0x25b   :  { %v774_v20 = vsel %vm698_vm3, -inf, %v718_v14  ;;  %v773_v21 = vsel %vm698_vm3, -inf, %v716_v15 }
 0x25c   :  { %971 = vst [vmem:[#allocation2 + $0x58] sm:$0xff] %v939_v12  ;;  %970 = vst [vmem:[#allocation2 + $0x50] sm:$0xff] %v938_v22 }
 0x25e   :  { %v817_v18 = vpop.permute.xlu1 %816  ;;  %v815_v19 = vpop.permute.xlu0 %814 }
 0x25f   :  { %v873_v17 = vsel %vm797_vm2, -inf, %v817_v18  ;;  %v872_v49 = vsel %vm797_vm2, -inf, %v815_v19 }
 0x260   :  { %v905_v16 = vmax.f32 %v774_v20, %v873_v17  ;;  %v904_v48 = vmax.f32 %v773_v21, %v872_v49 }
 0x262   :  { %v937_v23 = vmax.f32 %v1486_v61, %v905_v16  ;;  %v936_v27 = vmax.f32 %v1484_v60, %v904_v48  ;;  %v730_v28 = vpop.permute.xlu1 %729  ;;  %v728_v29 = vpop.permute.xlu0 %727 }
 0x263   :  { %v780_v53 = vsel %vm698_vm3, -inf, %v730_v28  ;;  %v779_v54 = vsel %vm698_vm3, -inf, %v728_v29 }
 0x264   :  { %969 = vst [vmem:[#allocation2 + $0x48] sm:$0xff] %v937_v23  ;;  %968 = vst [vmem:[#allocation2 + $0x40] sm:$0xff] %v936_v27 }
 0x266   :  { %v829_v45 = vpop.permute.xlu1 %828  ;;  %v827_v24 = vpop.permute.xlu0 %826 }
 0x267   :  { %v879_v55 = vsel %vm797_vm2, -inf, %v829_v45  ;;  %v878_v61 = vsel %vm797_vm2, -inf, %v827_v24 }
 0x268   :  { %v911_v56 = vmax.f32 %v780_v53, %v879_v55  ;;  %v910_v60 = vmax.f32 %v779_v54, %v878_v61 }
 0x26a   :  { %v943_v57 = vmax.f32 %v1504_v10, %v911_v56  ;;  %v942_v58 = vmax.f32 %v1502_v9, %v910_v60  ;;  %v726_v59 = vpop.permute.xlu1 %725  ;;  %v724_v62 = vpop.permute.xlu0 %723 }
 0x26b   :  { %v778_v30 = vsel %vm698_vm3, -inf, %v726_v59  ;;  %v777_v0 = vsel %vm698_vm3, -inf, %v724_v62 }
 0x26c   :  { %975 = vst [vmem:[#allocation2 + $0x78] sm:$0xff] %v943_v57  ;;  %974 = vst [vmem:[#allocation2 + $0x70] sm:$0xff] %v942_v58 }
 0x26e   :  { %v825_v31 = vpop.permute.xlu1 %824  ;;  %v823_v63 = vpop.permute.xlu0 %822 }
 0x26f   :  { %v877_v1 = vsel %vm797_vm2, -inf, %v825_v31  ;;  %v876_v10 = vsel %vm797_vm2, -inf, %v823_v63 }
 0x270   :  { %v909_v2 = vmax.f32 %v778_v30, %v877_v1  ;;  %v908_v9 = vmax.f32 %v777_v0, %v876_v10 }
 0x272   :  { %v941_v13 = vmax.f32 %v1522_v26, %v909_v2  ;;  %v940_v3 = vmax.f32 %v1520_v25, %v908_v9  ;;  %v738_v4 = vpop.permute.xlu1 %737  ;;  %v736_v5 = vpop.permute.xlu0 %735 }
 0x273   :  { %v784_v39 = vsel %vm698_vm3, -inf, %v738_v4  ;;  %v783_v11 = vsel %vm698_vm3, -inf, %v736_v5 }
 0x274   :  { %973 = vst [vmem:[#allocation2 + $0x68] sm:$0xff] %v941_v13  ;;  %972 = vst [vmem:[#allocation2 + $0x60] sm:$0xff] %v940_v3 }
 0x276   :  { %v837_v6 = vpop.permute.xlu1 %836  ;;  %v835_v7 = vpop.permute.xlu0 %834 }
 0x277   :  { %v883_v38 = vsel %vm797_vm2, -inf, %v837_v6  ;;  %v882_v26 = vsel %vm797_vm2, -inf, %v835_v7 }
 0x278   :  { %v915_v12 = vmax.f32 %v784_v39, %v883_v38  ;;  %v914_v25 = vmax.f32 %v783_v11, %v882_v26 }
 0x27a   :  { %v947_v22 = vmax.f32 %v1536_v33, %v915_v12  ;;  %v946_v14 = vmax.f32 %v1534_v32, %v914_v25  ;;  %v734_v15 = vpop.permute.xlu1 %733  ;;  %v732_v18 = vpop.permute.xlu0 %731 }
 0x27b   :  { %v782_v21 = vsel %vm698_vm3, -inf, %v734_v15  ;;  %v781_v17 = vsel %vm698_vm3, -inf, %v732_v18 }
 0x27c   :  { %979 = vst [vmem:[#allocation2 + $0x98] sm:$0xff] %v947_v22  ;;  %978 = vst [vmem:[#allocation2 + $0x90] sm:$0xff] %v946_v14 }
 0x27e   :  { %v833_v19 = vpop.permute.xlu1 %832  ;;  %v831_v20 = vpop.permute.xlu0 %830 }
 0x27f   :  { %v881_v49 = vsel %vm797_vm2, -inf, %v833_v19  ;;  %v880_v33 = vsel %vm797_vm2, -inf, %v831_v20 }
 0x280   :  { %v913_v16 = vmax.f32 %v782_v21, %v881_v49  ;;  %v912_v32 = vmax.f32 %v781_v17, %v880_v33 }
 0x282   :  { %v945_v48 = vmax.f32 %v1549_v34, %v913_v16  ;;  %v944_v23 = vmax.f32 %v1547_v8, %v912_v32  ;;  %v746_v27 = vpop.permute.xlu1 %745  ;;  %v744_v28 = vpop.permute.xlu0 %743 }
 0x283   :  { %v788_v24 = vsel %vm698_vm3, -inf, %v746_v27  ;;  %v787_v53 = vsel %vm698_vm3, -inf, %v744_v28 }
 0x284   :  { %977 = vst [vmem:[#allocation2 + $0x88] sm:$0xff] %v945_v48  ;;  %976 = vst [vmem:[#allocation2 + $0x80] sm:$0xff] %v944_v23 }
 0x286   :  { %v845_v29 = vpop.permute.xlu1 %844  ;;  %v843_v45 = vpop.permute.xlu0 %842 }
 0x287   :  { %v887_v54 = vsel %vm797_vm2, -inf, %v845_v29  ;;  %v886_v34 = vsel %vm797_vm2, -inf, %v843_v45 }
 0x288   :  { %v919_v55 = vmax.f32 %v788_v24, %v887_v54  ;;  %v918_v8 = vmax.f32 %v787_v53, %v886_v34 }
 0x28a   :  { %v951_v61 = vmax.f32 %v1561_v36, %v919_v55  ;;  %v950_v56 = vmax.f32 %v1559_v35, %v918_v8  ;;  %v742_v60 = vpop.permute.xlu1 %741  ;;  %v740_v57 = vpop.permute.xlu0 %739 }
 0x28b   :  { %v786_v62 = vsel %vm698_vm3, -inf, %v742_v60  ;;  %v785_v31 = vsel %vm698_vm3, -inf, %v740_v57 }
 0x28c   :  { %983 = vst [vmem:[#allocation2 + $0xb8] sm:$0xff] %v951_v61  ;;  %982 = vst [vmem:[#allocation2 + $0xb0] sm:$0xff] %v950_v56 }
 0x28e   :  { %v841_v58 = vpop.permute.xlu1 %840  ;;  %v839_v59 = vpop.permute.xlu0 %838 }
 0x28f   :  { %v885_v63 = vsel %vm797_vm2, -inf, %v841_v58  ;;  %v884_v36 = vsel %vm797_vm2, -inf, %v839_v59 }
 0x290   :  { %v917_v30 = vmax.f32 %v786_v62, %v885_v63  ;;  %v916_v35 = vmax.f32 %v785_v31, %v884_v36 }
 0x292   :  { %v949_v0 = vmax.f32 %v1573_v40, %v917_v30  ;;  %v948_v1 = vmax.f32 %v1571_v37, %v916_v35  ;;  %v754_v10 = vpop.permute.xlu1 %753  ;;  %v752_v2 = vpop.permute.xlu0 %751 }
 0x293   :  { %v792_v3 = vsel %vm698_vm3, -inf, %v754_v10  ;;  %v791_v4 = vsel %vm698_vm3, -inf, %v752_v2 }
 0x294   :  { %981 = vst [vmem:[#allocation2 + $0xa8] sm:$0xff] %v949_v0  ;;  %980 = vst [vmem:[#allocation2 + $0xa0] sm:$0xff] %v948_v1 }
 0x296   :  { %v853_v9 = vpop.permute.xlu1 %852  ;;  %v851_v13 = vpop.permute.xlu0 %850 }
 0x297   :  { %v891_v5 = vsel %vm797_vm2, -inf, %v853_v9  ;;  %v890_v40 = vsel %vm797_vm2, -inf, %v851_v13 }
 0x298   :  { %v923_v6 = vmax.f32 %v792_v3, %v891_v5  ;;  %v922_v37 = vmax.f32 %v791_v4, %v890_v40 }
 0x29a   :  { %v955_v7 = vmax.f32 %v1585_v42, %v923_v6  ;;  %v954_v39 = vmax.f32 %v1583_v41, %v922_v37  ;;  %v750_v11 = vpop.permute.xlu1 %749  ;;  %v748_v38 = vpop.permute.xlu0 %747 }
 0x29b   :  { %v790_v25 = vsel %vm698_vm3, -inf, %v750_v11  ;;  %v789_v22 = vsel %vm698_vm3, -inf, %v748_v38 }
 0x29c   :  { %987 = vst [vmem:[#allocation2 + $0xd8] sm:$0xff] %v955_v7  ;;  %986 = vst [vmem:[#allocation2 + $0xd0] sm:$0xff] %v954_v39 }
 0x29e   :  { %v849_v26 = vpop.permute.xlu1 %848  ;;  %v847_v12 = vpop.permute.xlu0 %846 }
 0x29f   :  { %v889_v14 = vsel %vm797_vm2, -inf, %v849_v26  ;;  %v888_v42 = vsel %vm797_vm2, -inf, %v847_v12 }
 0x2a0   :  { %v921_v15 = vmax.f32 %v790_v25, %v889_v14  ;;  %v920_v41 = vmax.f32 %v789_v22, %v888_v42 }
 0x2a2   :  { %v953_v18 = vmax.f32 %v1597_v44, %v921_v15  ;;  %v952_v19 = vmax.f32 %v1595_v43, %v920_v41  ;;  %v762_v20 = vpop.permute.xlu1 %761  ;;  %v760_v21 = vpop.permute.xlu0 %759 }
 0x2a3   :  { %v796_v53 = vsel %vm698_vm3, -inf, %v762_v20  ;;  %v795_v54 = vsel %vm698_vm3, -inf, %v760_v21 }
 0x2a4   :  { %985 = vst [vmem:[#allocation2 + $0xc8] sm:$0xff] %v953_v18  ;;  %984 = vst [vmem:[#allocation2 + $0xc0] sm:$0xff] %v952_v19 }
 0x2a6   :  { %v758_v17 = vpop.permute.xlu1 %757  ;;  %v756_v49 = vpop.permute.xlu0 %755 }
 0x2a7   :  { %v794_v32 = vsel %vm698_vm3, -inf, %v758_v17  ;;  %v793_v48 = vsel %vm698_vm3, -inf, %v756_v49 }
 0x2aa   :  { %v857_v33 = vpop.permute.xlu1 %856  ;;  %v855_v16 = vpop.permute.xlu0 %854 }
 0x2ab   :  { %v893_v23 = vsel %vm797_vm2, -inf, %v857_v33  ;;  %v892_v43 = vsel %vm797_vm2, -inf, %v855_v16 }
 0x2ac   :  { %v925_v44 = vmax.f32 %v794_v32, %v893_v23  ;;  %v924_v27 = vmax.f32 %v793_v48, %v892_v43 }
 0x2ae   :  { %v957_v28 = vmax.f32 %v1621_v52, %v925_v44  ;;  %v956_v29 = vmax.f32 %v1619_v51, %v924_v27  ;;  %v861_v45 = vpop.permute.xlu1 %860  ;;  %v859_v24 = vpop.permute.xlu0 %858 }
 0x2af   :  { %v895_v34 = vsel %vm797_vm2, -inf, %v861_v45  ;;  %v894_v55 = vsel %vm797_vm2, -inf, %v859_v24 }
 0x2b0   :  { %989 = vst [vmem:[#allocation2 + $0xe8] sm:$0xff] %v957_v28  ;;  %988 = vst [vmem:[#allocation2 + $0xe0] sm:$0xff] %v956_v29  ;;  %v927_v52 = vmax.f32 %v796_v53, %v895_v34  ;;  %v926_v51 = vmax.f32 %v795_v54, %v894_v55 }
 0x2b2   :  { %v959_v8 = vmax.f32 %v1611_v50, %v927_v52  ;;  %v958_v61 = vmax.f32 %v1609_v47, %v926_v51 }
 0x2b4   :  { %991 = vst [vmem:[#allocation2 + $0xf8] sm:$0xff] %v959_v8  ;;  %990 = vst [vmem:[#allocation2 + $0xf0] sm:$0xff] %v958_v61 }
 0x2b5   :  { %1216 = shalt.err (!%p1213_p4)
}
 0x2b6   :  { %s1217_s17 = scalar_lea.hbm %s1812_s5, 4096 }
 0x2b7   :  { %p1218_p5 = scmp.ne.s32.totalorder %s1812_s5, %s1217_s17  ;;  %p1221_p6 = scmp.lt.u32.totalorder %s1217_s17, %s1812_s5 }
 0x2b9   :  { %p1223_p7 = pnand %p1221_p6, %p1218_p5 }
 0x2bb   :  { %1226 = shalt.err (!%p1223_p7)
}
 0x2bc   :  { %s1232_s22 = smov 128   ;;  %s1233_s23 = smov 8  }
 0x2bd   :  { %1003 = dma.vmem_to_hbm [thread:$0]  %s998_s13, 4096, %s1812_s5, [#allocation3], %s1232_s22, %s1232_s22, %s1233_s23  }
 0x2be   :  { %1227 = dma.done.wait [#allocation3], 4096  }
 0x2bf   :  { %1228 = vsyncadd [#allocation3], 4294963200 }
 0x2c0   :  { %1007 = vsyncpa [#allocation3], 1 }

</bundles_post_ra>
